<compile_context>
chip_gen: v7x
topology: tpu7x:2x2x1
jax: 0.10.0
libtpu: 0.0.40
codegen_flags: <defaults>
</compile_context>

<pallas_src>
import functools

import jax
import jax.numpy as jnp
from jax.experimental import pallas as pl
from jax.experimental.pallas import tpu as pltpu

_EPS = 1e-5
_MAX_TILE = 2048  # hard cap on any single tile edge


def _process_kernel(x_ref, w_ref, bias_ref, gamma_ref, beta_ref, o_ref, *,
                    tk, slice_x):
    """Grid = (feature tiles j [parallel], K tiles k [arbitrary, innermost]).

    x_ref: (B, D_in_p) f32 (resident) or (B, tk) f32 (streamed)
    w_ref: (tk, tn) f32 ; bias/gamma/beta: (1, tn) f32
    o_ref: (B, tn) f32 — doubles as the accumulator (constant block across k).
    """
    k = pl.program_id(1)

    @pl.when(k == 0)
    def _init():
        # Seed the accumulator with the Linear bias (exact nn.Linear semantics;
        # costs nothing over a zero init).
        o_ref[...] = jnp.zeros_like(o_ref) + bias_ref[...]

    if slice_x:
        start = pl.multiple_of(k * tk, tk)
        x_blk = x_ref[:, pl.ds(start, tk)]
    else:
        x_blk = x_ref[...]

    # bf16 MXU inputs, f32 accumulation.
    o_ref[...] += jnp.dot(
        x_blk.astype(jnp.bfloat16),
        w_ref[...].astype(jnp.bfloat16),
        preferred_element_type=jnp.float32,
    )

    @pl.when(k == pl.num_programs(1) - 1)
    def _finalize():
        # Training-mode BatchNorm1d (batch mean, biased variance) + ReLU,
        # folded into one scale/shift pass over the tile.
        y = o_ref[...]
        mean = jnp.mean(y, axis=0, keepdims=True)
        var = jnp.maximum(
            jnp.mean(y * y, axis=0, keepdims=True) - mean * mean, 0.0)
        scale = gamma_ref[...] * jax.lax.rsqrt(var + _EPS)   # (1, tn)
        shift = beta_ref[...] - mean * scale                 # (1, tn)
        o_ref[...] = jnp.maximum(y * scale + shift, 0.0).astype(o_ref.dtype)


def _round_up(x, m):
    return (x + m - 1) // m * m


def _vmem_budget_bytes():
    """~75% of per-core VMEM: ~48 MiB on v7x, ~96 MiB on v5e/v6e."""
    try:
        cap = int(pltpu.get_tpu_info().vmem_capacity_bytes)
        return (3 * cap) // 4
    except Exception:
        return 48 * 1024 * 1024  # safe on every generation


def _tile_candidates(dim, hard_cap):
    """Descending legal tile sizes: whole dim, then 128-multiples.

    If `dim` is a multiple of 128 only exact divisors are offered (no padding
    waste); otherwise 128-multiples are offered and the wrapper zero-pads.
    """
    cands = []
    if dim <= hard_cap:
        cands.append(dim)
    top = min(hard_cap, _round_up(dim, 128))
    top -= top % 128
    t = top
    while t >= 128:
        if (dim % 128 != 0 or dim % t == 0) and t not in cands:
            cands.append(t)
        t -= 128
    return cands or [dim]


def _plan_tiles(B, D_in, D_out, budget):
    """Pick (x_resident, tk, tn, footprint) so the VMEM footprint fits."""
    x_can_be_resident = 8 * B * _round_up(D_in, 128) <= budget // 2

    tn_cands = _tile_candidates(D_out, _MAX_TILE)
    # Keep >= 2 steps on the parallel feature axis (v7x has 2 TensorCores);
    # only when it does not force padding.
    if D_out % 128 == 0 and D_out >= 256:
        halved = [t for t in tn_cands if t <= D_out // 2]
        if halved:
            tn_cands = halved
    tk_cands = _tile_candidates(D_in, _MAX_TILE)

    def footprint(tk, tn, x_res):
        x_b = 8 * B * _round_up(D_in, tk) if x_res else 8 * B * tk
        w_b = 8 * tk * tn            # double-buffered f32 weight tile
        o_b = 8 * B * tn             # double-buffered f32 output block
        t_b = 8 * B * tn             # epilogue temporaries headroom
        return x_b + w_b + o_b + t_b + 64 * tn + (1 << 20)

    for x_res in ([True, False] if x_can_be_resident else [False]):
        for tn in tn_cands:          # shrink tk first, then tn
            for tk in tk_cands:
                fp = footprint(tk, tn, x_res)
                if fp <= budget:
                    return x_res, tk, tn, fp
    # Nothing fits (huge B): smallest tiles, let Mosaic try.
    # TODO(synk): very large B needs batch tiling + cross-tile BN stats
    # (running sum / sum-of-squares) to stay within VMEM.
    tk, tn = tk_cands[-1], tn_cands[-1]
    return False, tk, tn, footprint(tk, tn, False)


@jax.jit
def process_forward(x, w, b, gamma, beta):
    """x: [B, D_in]; w: [D_in, D_out] (PyTorch `linear.weight.T`);
    b, gamma, beta: [D_out].  Returns ReLU(BatchNorm1d(x @ w + b)) in f32."""
    B, D_in = x.shape
    D_out = w.shape[1]

    budget = _vmem_budget_bytes()
    x_resident, tk, tn, fp_est = _plan_tiles(B, D_in, D_out, budget)

    D_in_p = _round_up(D_in, tk)
    D_out_p = _round_up(D_out, tn)
    n_k = D_in_p // tk
    n_j = D_out_p // tn

    x_p, w_p, b_p, g_p, bt_p = x, w, b, gamma, beta
    if D_in_p != D_in:
        x_p = jnp.pad(x_p, ((0, 0), (0, D_in_p - D_in)))
        w_p = jnp.pad(w_p, ((0, D_in_p - D_in), (0, 0)))
    if D_out_p != D_out:
        w_p = jnp.pad(w_p, ((0, 0), (0, D_out_p - D_out)))
        b_p = jnp.pad(b_p, (0, D_out_p - D_out))
        g_p = jnp.pad(g_p, (0, D_out_p - D_out))
        bt_p = jnp.pad(bt_p, (0, D_out_p - D_out))

    bias2 = b_p.reshape(1, D_out_p).astype(jnp.float32)
    gamma2 = g_p.reshape(1, D_out_p).astype(jnp.float32)
    beta2 = bt_p.reshape(1, D_out_p).astype(jnp.float32)

    if x_resident:
        # Constant block index -> x is DMA'd into VMEM exactly once.
        x_spec = pl.BlockSpec((B, D_in_p), lambda j, k: (0, 0))
    else:
        # TODO(synk): streamed x is re-fetched once per feature tile; only hit
        # when x itself does not fit in half the VMEM budget.
        x_spec = pl.BlockSpec((B, tk), lambda j, k: (0, k))

    kernel = functools.partial(
        _process_kernel, tk=tk, slice_x=(x_resident and n_k > 1))

    vmem_limit = int(min(max(budget, fp_est), 120 * 1024 * 1024))

    out = pl.pallas_call(
        kernel,
        out_shape=jax.ShapeDtypeStruct((B, D_out_p), jnp.float32),
        grid_spec=pltpu.PrefetchScalarGridSpec(
            num_scalar_prefetch=0,
            grid=(n_j, n_k),
            in_specs=[
                x_spec,                                        # x
                pl.BlockSpec((tk, tn), lambda j, k: (k, j)),   # W (streamed)
                pl.BlockSpec((1, tn), lambda j, k: (0, j)),    # bias
                pl.BlockSpec((1, tn), lambda j, k: (0, j)),    # gamma
                pl.BlockSpec((1, tn), lambda j, k: (0, j)),    # beta
            ],
            out_specs=pl.BlockSpec((B, tn), lambda j, k: (0, j)),
        ),
        compiler_params=pltpu.CompilerParams(
            dimension_semantics=("parallel", "arbitrary"),
            vmem_limit_bytes=vmem_limit,
        ),
    )(x_p.astype(jnp.float32), w_p.astype(jnp.float32), bias2, gamma2, beta2)

    if D_out_p != D_out:
        out = out[:, :D_out]
    return out


def _reference_f32(x, w, b, gamma, beta):
    """Exact f32 emulation of the PyTorch module (training-mode BN)."""
    y = x @ w + b[None, :]
    mean = jnp.mean(y, axis=0, keepdims=True)
    var = jnp.mean((y - mean) ** 2, axis=0, keepdims=True)
    y_hat = (y - mean) * jax.lax.rsqrt(var + _EPS)
    return jnp.maximum(y_hat * gamma[None, :] + beta[None, :], 0.0)


def _reference_matched(x, w, b, gamma, beta):
    """Reference using the same bf16 matmul inputs as the kernel."""
    y = jnp.dot(x.astype(jnp.bfloat16), w.astype(jnp.bfloat16),
                preferred_element_type=jnp.float32) + b[None, :]
    mean = jnp.mean(y, axis=0, keepdims=True)
    var = jnp.mean((y - mean) ** 2, axis=0, keepdims=True)
    scale = gamma[None, :] * jax.lax.rsqrt(var + _EPS)
    return jnp.maximum((y - mean) * scale + beta[None, :], 0.0)


if __name__ == "__main__":
    # Small shapes consistent with the module: batch=8, input=32, output=32.
    B, D_in, D_out = 8, 32, 32

    key = jax.random.PRNGKey(0)
    k_x, k_w, k_b, k_g, k_bt = jax.random.split(key, 5)

    x = jax.random.normal(k_x, (B, D_in), dtype=jnp.float32)
    bound = 1.0 / (D_in ** 0.5)
    w = jax.random.uniform(k_w, (D_in, D_out), minval=-bound, maxval=bound,
                           dtype=jnp.float32)
    b = jax.random.uniform(k_b, (D_out,), minval=-bound, maxval=bound,
                           dtype=jnp.float32)
    gamma = 1.0 + 0.1 * jax.random.normal(k_g, (D_out,), dtype=jnp.float32)
    beta = 0.1 * jax.random.normal(k_bt, (D_out,), dtype=jnp.float32)

    out = process_forward(x, w, b, gamma, beta)
    out = jax.block_until_ready(out)
    assert out.shape == (B, D_out)

    # Tight check vs. a reference using the same bf16 matmul inputs.
    ref_matched = _reference_matched(x, w, b, gamma, beta)
    assert jnp.allclose(out, ref_matched, atol=5e-4, rtol=5e-4), \
        "mismatch vs matched (bf16-matmul) reference"

    # Coarse sanity check vs. exact f32 PyTorch semantics (only delta is the
    # bf16 MXU-input rounding).
    ref_f32 = _reference_f32(x, w, b, gamma, beta)
    assert jnp.allclose(out, ref_f32, atol=0.15, rtol=0.15), \
        "mismatch vs f32 reference"

    print("KERNEL_OK")
</pallas_src>

<mosaic_0001>
module attributes {stable_mosaic.version = 11 : i64} {
  func.func @_process_kernel(%arg0: i32, %arg1: i32, %arg2: memref<8x32xf32, #tpu.memory_space<vmem>>, %arg3: memref<32x32xf32, #tpu.memory_space<vmem>>, %arg4: memref<1x32xf32, #tpu.memory_space<vmem>>, %arg5: memref<1x32xf32, #tpu.memory_space<vmem>>, %arg6: memref<1x32xf32, #tpu.memory_space<vmem>>, %arg7: memref<8x32xf32, #tpu.memory_space<vmem>>) attributes {dimension_semantics = [#tpu.dimension_semantics<parallel>, #tpu.dimension_semantics<arbitrary>], iteration_bounds = array<i64: 1, 1>, scalar_prefetch = 0 : i64, scratch_operands = 0 : i64, tpu.core_type = #tpu.core_type<tc>, window_params = [{pipeline_mode = #tpu.pipeline_mode<synchronous>, transform_indices = @transform_0, window_bounds = array<i64: 8, 32>}, {transform_indices = @transform_1, window_bounds = array<i64: 32, 32>}, {transform_indices = @transform_2, window_bounds = array<i64: 1, 32>}, {transform_indices = @transform_3, window_bounds = array<i64: 1, 32>}, {transform_indices = @transform_4, window_bounds = array<i64: 1, 32>}, {transform_indices = @transform_5, window_bounds = array<i64: 8, 32>}]} {
    %c0_i32 = arith.constant 0 : i32
    %0 = arith.cmpi eq, %arg1, %c0_i32 : i32
    %1 = arith.extui %0 : i1 to i32
    %c0_i32_0 = arith.constant 0 : i32
    %2 = arith.cmpi ne, %1, %c0_i32_0 : i32
    scf.if %2 {
      %cst_10 = arith.constant 0.000000e+00 : f32
      %14 = vector.broadcast %cst_10 : f32 to vector<8x32xf32>
      %c0_11 = arith.constant 0 : index
      %c0_12 = arith.constant 0 : index
      %15 = vector.load %arg4[%c0_11, %c0_12] : memref<1x32xf32, #tpu.memory_space<vmem>>, vector<1x32xf32>
      %16 = vector.broadcast %15 : vector<1x32xf32> to vector<8x32xf32>
      %17 = arith.addf %14, %16 : vector<8x32xf32>
      %c0_13 = arith.constant 0 : index
      %c0_14 = arith.constant 0 : index
      %18 = vector.load %arg7[%c0_13, %c0_14] : memref<8x32xf32, #tpu.memory_space<vmem>>, vector<8x32xf32>
      tpu.vector_store %arg7[%c0_13, %c0_14], %17 {strides = array<i32>} : memref<8x32xf32, #tpu.memory_space<vmem>>, vector<8x32xf32>,
    } else {
    }
    %c0 = arith.constant 0 : index
    %c0_1 = arith.constant 0 : index
    %3 = vector.load %arg2[%c0, %c0_1] : memref<8x32xf32, #tpu.memory_space<vmem>>, vector<8x32xf32>
    %c0_2 = arith.constant 0 : index
    %c0_3 = arith.constant 0 : index
    %4 = vector.load %arg7[%c0_2, %c0_3] : memref<8x32xf32, #tpu.memory_space<vmem>>, vector<8x32xf32>
    %5 = arith.truncf %3 : vector<8x32xf32> to vector<8x32xbf16>
    %c0_4 = arith.constant 0 : index
    %c0_5 = arith.constant 0 : index
    %6 = vector.load %arg3[%c0_4, %c0_5] : memref<32x32xf32, #tpu.memory_space<vmem>>, vector<32x32xf32>
    %7 = arith.truncf %6 : vector<32x32xf32> to vector<32x32xbf16>
    %cst = arith.constant dense<0.000000e+00> : vector<8x32xf32>
    %8 = tpu.matmul %5, %7, %cst {dimension_numbers = #tpu.dot_dimension_numbers<[1], [0], [0], [1], [0, 0, 1, 1], [], []>} : vector<8x32xbf16>, vector<32x32xbf16>, vector<8x32xf32> -> vector<8x32xf32>
    %9 = arith.addf %4, %8 : vector<8x32xf32>
    %c0_6 = arith.constant 0 : index
    %c0_7 = arith.constant 0 : index
    %10 = vector.load %arg7[%c0_6, %c0_7] : memref<8x32xf32, #tpu.memory_space<vmem>>, vector<8x32xf32>
    tpu.vector_store %arg7[%c0_6, %c0_7], %9 {strides = array<i32>} : memref<8x32xf32, #tpu.memory_space<vmem>>, vector<8x32xf32>,
    %c0_i32_8 = arith.constant 0 : i32
    %11 = arith.cmpi eq, %arg1, %c0_i32_8 : i32
    %12 = arith.extui %11 : i1 to i32
    %c0_i32_9 = arith.constant 0 : i32
    %13 = arith.cmpi ne, %12, %c0_i32_9 : i32
    scf.if %13 {
      %c0_10 = arith.constant 0 : index
      %c0_11 = arith.constant 0 : index
      %14 = vector.load %arg7[%c0_10, %c0_11] : memref<8x32xf32, #tpu.memory_space<vmem>>, vector<8x32xf32>
      %cst_12 = arith.constant dense<0.000000e+00> : vector<32xf32>
      %15 = vector.multi_reduction <add>, %14, %cst_12 [0] : vector<8x32xf32> to vector<32xf32>
      %16 = vector.shape_cast %15 : vector<32xf32> to vector<1x32xf32>
      %cst_13 = arith.constant 8.000000e+00 : f32
      %17 = vector.broadcast %cst_13 : f32 to vector<1x32xf32>
      %18 = arith.divf %16, %17 : vector<1x32xf32>
      %19 = arith.mulf %14, %14 : vector<8x32xf32>
      %cst_14 = arith.constant dense<0.000000e+00> : vector<32xf32>
      %20 = vector.multi_reduction <add>, %19, %cst_14 [0] : vector<8x32xf32> to vector<32xf32>
      %21 = vector.shape_cast %20 : vector<32xf32> to vector<1x32xf32>
      %cst_15 = arith.constant 8.000000e+00 : f32
      %22 = vector.broadcast %cst_15 : f32 to vector<1x32xf32>
      %23 = arith.divf %21, %22 : vector<1x32xf32>
      %24 = arith.mulf %18, %18 : vector<1x32xf32>
      %25 = arith.subf %23, %24 : vector<1x32xf32>
      %cst_16 = arith.constant 0.000000e+00 : f32
      %26 = vector.broadcast %cst_16 : f32 to vector<1x32xf32>
      %27 = arith.maximumf %25, %26 : vector<1x32xf32>
      %c0_17 = arith.constant 0 : index
      %c0_18 = arith.constant 0 : index
      %28 = vector.load %arg5[%c0_17, %c0_18] : memref<1x32xf32, #tpu.memory_space<vmem>>, vector<1x32xf32>
      %cst_19 = arith.constant 9.99999974E-6 : f32
      %29 = vector.broadcast %cst_19 : f32 to vector<1x32xf32>
      %30 = arith.addf %27, %29 : vector<1x32xf32>
      %31 = math.rsqrt %30 : vector<1x32xf32>
      %32 = arith.mulf %28, %31 : vector<1x32xf32>
      %c0_20 = arith.constant 0 : index
      %c0_21 = arith.constant 0 : index
      %33 = vector.load %arg6[%c0_20, %c0_21] : memref<1x32xf32, #tpu.memory_space<vmem>>, vector<1x32xf32>
      %34 = arith.mulf %18, %32 : vector<1x32xf32>
      %35 = arith.subf %33, %34 : vector<1x32xf32>
      %36 = vector.broadcast %32 : vector<1x32xf32> to vector<8x32xf32>
      %37 = arith.mulf %14, %36 : vector<8x32xf32>
      %38 = vector.broadcast %35 : vector<1x32xf32> to vector<8x32xf32>
      %39 = arith.addf %37, %38 : vector<8x32xf32>
      %cst_22 = arith.constant 0.000000e+00 : f32
      %40 = vector.broadcast %cst_22 : f32 to vector<8x32xf32>
      %41 = arith.maximumf %39, %40 : vector<8x32xf32>
      %c0_23 = arith.constant 0 : index
      %c0_24 = arith.constant 0 : index
      %42 = vector.load %arg7[%c0_23, %c0_24] : memref<8x32xf32, #tpu.memory_space<vmem>>, vector<8x32xf32>
      tpu.vector_store %arg7[%c0_23, %c0_24], %41 {strides = array<i32>} : memref<8x32xf32, #tpu.memory_space<vmem>>, vector<8x32xf32>,
    } else {
    }
    return
  }
  func.func @transform_0(%arg0: i32, %arg1: i32) -> (i32, i32) {
    %c0_i32 = arith.constant 0 : i32
    %c0_i32_0 = arith.constant 0 : i32
    %c0_i32_1 = arith.constant 0 : i32
    return %c0_i32, %c0_i32_0 : i32, i32
  }
  func.func @transform_1(%arg0: i32, %arg1: i32) -> (i32, i32) {
    %c0_i32 = arith.constant 0 : i32
    return %arg1, %arg0 : i32, i32
  }
  func.func @transform_2(%arg0: i32, %arg1: i32) -> (i32, i32) {
    %c0_i32 = arith.constant 0 : i32
    %c0_i32_0 = arith.constant 0 : i32
    return %c0_i32, %arg0 : i32, i32
  }
  func.func @transform_3(%arg0: i32, %arg1: i32) -> (i32, i32) {
    %c0_i32 = arith.constant 0 : i32
    %c0_i32_0 = arith.constant 0 : i32
    return %c0_i32, %arg0 : i32, i32
  }
  func.func @transform_4(%arg0: i32, %arg1: i32) -> (i32, i32) {
    %c0_i32 = arith.constant 0 : i32
    %c0_i32_0 = arith.constant 0 : i32
    return %c0_i32, %arg0 : i32, i32
  }
  func.func @transform_5(%arg0: i32, %arg1: i32) -> (i32, i32) {
    %c0_i32 = arith.constant 0 : i32
    %c0_i32_0 = arith.constant 0 : i32
    return %c0_i32, %arg0 : i32, i32
  }
}

</mosaic_0001>

<bundles_post_ra>
// kernel: process_forward.1
= control target key start
LH: loop header
LB: loop body
LE: loop exit
PB: predicated region body
PF: predicated region fallthrough
CT: control target
= control target key end

     0   :  { %10 = vsyncpa [#allocation3], 0  ;;  %s315_s0 = inlined_call_operand.vmem [shape: f32[8,32], index: 0, kind: input, shape index: {}]   ;;  %s316_s1 = inlined_call_operand.hbm [shape: f32[32,32], index: 1, kind: input, shape index: {}]   ;;  %s317_s2 = inlined_call_operand.vmem [shape: f32[1,32], index: 2, kind: input, shape index: {}]   ;;  %s318_s3 = inlined_call_operand.vmem [shape: f32[1,32], index: 3, kind: input, shape index: {}]   ;;  %s319_s4 = inlined_call_operand.vmem [shape: f32[1,32], index: 4, kind: input, shape index: {}]   ;;  %s320_s5 = inlined_call_operand.hbm [shape: f32[8,32], index: 5, kind: output, shape index: {}]  }
   0x1   :  { %11 = vsyncpa [#allocation4], 0  ;;  %s237_s18 = smov [#allocation2]   ;;  %s189_s22 = scalar_lea.hbm %s316_s1, 512 }
   0x2   :  { %s19_s19 = sshll.u32 %s237_s18, 4  ;;  %p190_p0 = scmp.ne.s32.totalorder %s316_s1, %s189_s22  ;;  %s20_s19 = int_to_ptr.vmem [resolvable:$true] %s19_s19 }
   0x3   :  { %p193_p1 = scmp.lt.u32.totalorder %s189_s22, %s316_s1 }
   0x5   :  { %p195_p2 = pnand %p193_p1, %p190_p0 }
   0x7   :  { %198 = shalt.err (!%p195_p2)
}
   0x8   :  { %s199_s27 = scalar_lea.vmem %s20_s19, 512  ;;  %p204_p4 = scmp.lt.s32.totalorder %s20_s19, %s20_s19 }
   0x9   :  { %p200_p3 = scmp.ne.s32.totalorder %s20_s19, %s199_s27  ;;  %p205_p5 = scmp.lt.s32.totalorder %s199_s27, %s199_s27 }
   0xb   :  { %p206_p6 = por %p205_p5, %p204_p4 }
   0xd   :  { %p207_p7 = pnand %p206_p6, %p200_p3 }
   0xf   :  { %210 = shalt.err (!%p207_p7)
}
  0x10   :  { %s238_s28 = smov 128   ;;  %s239_s29 = smov 8  }
  0x11   :  { %25 = dma.hbm_to_vmem [thread:$0]  %s316_s1, 512, %s20_s19, [#allocation3], %s238_s28, %s238_s28, %s239_s29  }
  0x12   :  { %233 = dma.done.wait [#allocation3], 512  }
  0x13   :  { %234 = vsyncadd [#allocation3], 4294966784  ;;  %v240_v0 = vmov 0.0   ;;  %vm241_vm0 = vmmov 0   ;;  %v53_v1 = vld [vmem:[#allocation2] sm:$0xff]  ;;  %v54_v2 = vld [vmem:[#allocation2 + $0x8] sm:$0xff]  ;;  %v138_v38 = vlaneseq }
  0x14   :  { %173 = vmatprep.subr.bf16.mxu0 %v240_v0  ;;  %177 = vmatprep.mubr.msk.bf16.mxu0 %vm241_vm0, %v240_v0  ;;  %v55_v3 = vld [vmem:[#allocation2 + $0x10] sm:$0xff]  ;;  %v57_v4 = vpack.c.bf16 %v54_v2, %v53_v1  ;;  %v56_v5 = vld [vmem:[#allocation2 + $0x18] sm:$0xff]  ;;  %vm48_vm1 = vcmask 261120   ;;  %v168_v6 = vld [vmem:[%s317_s2] ss:$0 sm:$0xff]  ;;  %s242_s12 = smov [#allocation5]  }
  0x15   :  { %49 = vst.msk [vmem:[#allocation5] sm:$0xff] %vm48_vm1, %v168_v6  ;;  %v58_v7 = vpack.c.bf16 %v56_v5, %v55_v3  ;;  %v50_v8 = vld [vmem:[%s315_s0] sm:$0xff]  ;;  %v139_v39 = vshrl.u32 %v138_v38, 7  ;;  %s159_s13 = sshll.u32 %s242_s12, 4  ;;  %s160_s13 = int_to_ptr.vmem [resolvable:$true] %s159_s13 }
  0x16   :  { %174 = vmatpush3.bf16.msra.mxu0 %v57_v4  ;;  %v52_v9 = vpack.c.bf16 %v50_v8, %v50_v8  ;;  %v130_v40 = vld [vmem:[%s318_s3] sm:$0x1]  ;;  %s211_s3 = scalar_lea.vmem %s160_s13, 128  ;;  %p216_p9 = scmp.lt.s32.totalorder %s160_s13, %s160_s13 }
  0x17   :  { %175 = vmatprep.subr.bf16.mxu0 %v240_v0  ;;  %v140_v41 = vsub.s32 0, %v139_v39  ;;  %v134_v44 = vld [vmem:[%s319_s4] sm:$0x1]  ;;  %p212_p8 = scmp.ne.s32.totalorder %s160_s13, %s211_s3  ;;  %p217_p10 = scmp.lt.s32.totalorder %s211_s3, %s211_s3 }
  0x19   :  { %p218_p11 = por %p217_p10, %p216_p9 }
  0x1a   :  { %176 = vmatpush3.bf16.msra.mxu0 %v58_v7 }
  0x1b   :  { %p219_p12 = pnand %p218_p11, %p212_p8 }
  0x1c   :  { %v51_v10 = vld [vmem:[#allocation5] sm:$0xff] }
  0x1d   :  { %178 = vmatmul.mubr.msk.bf16.vlgmr.msra.gmra.mrb[0].mxu0 %vm48_vm1, %v52_v9 }
  0xf0   :  { %v97_v11 = vpop.f32.mrb[0].mxu0 }
  0xf1   :  { %v103_v12 = vadd.f32 %v97_v11, %v51_v10  ;;  %v179_v13 = vpop.f32.mrb[1].mxu0 }
  0xf2   :  { %v100_v14 = vpop.f32.mrb[2].mxu0 }
  0xf3   :  { %104 = vst.msk [vmem:[#allocation5] sm:$0xff] %vm48_vm1, %v103_v12  ;;  %v180_v15 = vpop.f32.mrb[3].mxu0 }
  0xfa   :  { %v108_v16 = vld [vmem:[#allocation5] sm:$0xff] }
  0xfb   :  { %v109_v17 = vsel %vm48_vm1, %v108_v16, 0.0  ;;  %v118_v18 = vmul.f32 %v108_v16, %v108_v16 }
  0xfc   :  { %v110_v19 = vrot.slane %v109_v17, 4 }
  0xfd   :  { %v119_v20 = vsel %vm48_vm1, %v118_v18, 0.0 }
  0xfe   :  { %v111_v21 = vadd.f32 %v110_v19, %v109_v17  ;;  %v120_v22 = vrot.slane %v119_v20, 4 }
 0x100   :  { %v112_v23 = vrot.slane %v111_v21, 2  ;;  %v121_v24 = vadd.f32 %v120_v22, %v119_v20 }
 0x102   :  { %v113_v25 = vadd.f32 %v112_v23, %v111_v21  ;;  %v122_v26 = vrot.slane %v121_v24, 2 }
 0x104   :  { %v114_v27 = vrot.slane %v113_v25, 1  ;;  %v123_v28 = vadd.f32 %v122_v26, %v121_v24 }
 0x106   :  { %v115_v29 = vadd.f32 %v114_v27, %v113_v25  ;;  %v124_v30 = vrot.slane %v123_v28, 1 }
 0x108   :  { %v117_v31 = vmul.f32 0.125, %v115_v29  ;;  %v125_v32 = vadd.f32 %v124_v30, %v123_v28 }
 0x10a   :  { %v126_v33 = vmul.f32 0.125, %v125_v32  ;;  %v127_v34 = vmul.f32 %v117_v31, %v117_v31 }
 0x10c   :  { %v128_v35 = vsub.f32 %v126_v33, %v127_v34 }
 0x10e   :  { %v129_v36 = vmax.f32 %v128_v35, 0.0 }
 0x110   :  { %v131_v37 = vadd.f32 1e-05, %v129_v36 }
 0x112   :  { %187 = vrsqrt.f32 %v131_v37 }
 0x11c   :  { %v188_v42 = vpop.eup %187 }
 0x11d   :  { %v133_v43 = vmul.f32 %v188_v42, %v130_v40 }
 0x11f   :  { %v135_v45 = vmul.f32 %v133_v43, %v117_v31  ;;  %v141_v46 = vrot.slane %v133_v43, %v140_v41 }
 0x121   :  { %v136_v47 = vsub.f32 %v134_v44, %v135_v45  ;;  %v143_v48 = vmul.f32 %v141_v46, %v108_v16 }
 0x123   :  { %v148_v49 = vrot.slane %v136_v47, %v140_v41 }
 0x125   :  { %v150_v50 = vadd.f32 %v148_v49, %v143_v48 }
 0x127   :  { %v151_v51 = vmax.f32 %v150_v50, 0.0 }
 0x129   :  { %152 = vst.msk [vmem:[#allocation5] sm:$0xff] %vm48_vm1, %v151_v51 }
 0x12a   :  { %222 = shalt.err (!%p219_p12)
}
 0x12b   :  { %s223_s15 = scalar_lea.hbm %s320_s5, 128 }
 0x12c   :  { %p224_p13 = scmp.ne.s32.totalorder %s320_s5, %s223_s15  ;;  %p227_p0 = scmp.lt.u32.totalorder %s223_s15, %s320_s5 }
 0x12e   :  { %p229_p1 = pnand %p227_p0, %p224_p13 }
 0x130   :  { %232 = shalt.err (!%p229_p1)
}
 0x131   :  { %162 = dma.vmem_to_hbm [thread:$0]  %s160_s13, 128, %s320_s5, [#allocation4]  }
 0x132   :  { %235 = dma.done.wait [#allocation4], 128  }
 0x133   :  { %236 = vsyncadd [#allocation4], 4294967168 }
 0x134   :  { %166 = vsyncpa [#allocation3], 1 }
 0x135   :  { %167 = vsyncpa [#allocation4], 1 }

</bundles_post_ra>
